<compile_context>
chip_gen: v7x
topology: tpu7x:2x2x1
jax: 0.10.0
libtpu: 0.0.40
codegen_flags: <defaults>
</compile_context>

<pallas_src>
import jax
import jax.numpy as jnp
from jax.experimental import pallas as pl
from jax.experimental.pallas import tpu as pltpu

ADV_STEP_SIZE = 0.008


def _round_up(v: int, m: int) -> int:
    return ((v + m - 1) // m) * m


def _prompt_kernel(batch_ref, x_ref, b_ref, o_ref):
    # batch_ref: (tile_n, 1)   int32   graph id per row of this tile
    # x_ref:     (tile_n, D)   input tile
    # b_ref:     (g_pad, D)    f32 bias table, VMEM-resident (constant block)
    # o_ref:     (tile_n, D)   output tile (fully overwritten; no RMW)
    tile_n = x_ref.shape[0]
    g_pad = b_ref.shape[0]

    # One-hot gather of bias rows: (tile_n, g_pad) @ (g_pad, D) on the MXU.
    # Exact for f32 (coefficients are 0/1); out-of-range ids -> zero bias row.
    gids = jax.lax.broadcasted_iota(jnp.int32, (tile_n, g_pad), 1)
    one_hot = (batch_ref[...] == gids).astype(jnp.float32)
    gathered = jnp.dot(one_hot, b_ref[...], preferred_element_type=jnp.float32)

    o_ref[...] = (x_ref[...].astype(jnp.float32) + gathered).astype(o_ref.dtype)


def prompt_forward(x: jax.Array, b: jax.Array, batch: jax.Array,
                   *, max_tile_n: int = 1024) -> jax.Array:
    """x: [N, D], b: [G, D], batch: [N] int with values in [0, G)."""
    N, D = x.shape
    G = b.shape[0]
    itemsize = jnp.dtype(x.dtype).itemsize

    # Small, cheap pads: only the tiny bias table (sublane-align G).
    g_pad = _round_up(G, 8)
    b_p = b.astype(jnp.float32)
    if g_pad != G:
        b_p = jnp.pad(b_p, ((0, g_pad - G), (0, 0)))
    batch_col = batch.astype(jnp.int32).reshape(N, 1)

    # ---- tile_n under a VMEM budget that fits every TPU generation ----
    # Per step: x + out double-buffered (4 buffers) + batch sliver (1 lane
    # padded to 128) double-buffered, plus the resident bias table.
    d_lanes = _round_up(D, 128)                       # VMEM lane padding
    b_bytes = 2 * g_pad * d_lanes * 4                 # resident bias (w/ margin)
    per_row = 4 * d_lanes * itemsize + 2 * 128 * 4
    budget = 24 * 1024 * 1024                         # << 64 MiB v7x physical
    tile_n = max(8, min(max_tile_n, (budget - b_bytes) // per_row))
    tile_n = (tile_n // 8) * 8
    # Keep >=2 (ideally >=4) grid steps when data allows (v7x 2-TC split),
    # but don't shrink below the ~512-row HBM-roofline sweet spot, and never
    # exceed the (8-aligned) data extent.
    tile_n = min(tile_n, max(512, _round_up(pl.cdiv(N, 4), 8)), _round_up(N, 8))
    tile_n = max(8, (tile_n // 8) * 8)

    grid = (pl.cdiv(N, tile_n),)

    vmem_needed = (4 * tile_n * d_lanes * itemsize    # x + out double buffers
                   + 2 * tile_n * 128 * 4             # batch id blocks
                   + b_bytes)
    vmem_limit = int(min(56 * 1024 * 1024,
                         max(32 * 1024 * 1024, 2 * vmem_needed)))

    cost = pl.CostEstimate(
        flops=2 * N * g_pad * D + N * D,
        transcendentals=0,
        bytes_accessed=2 * N * D * itemsize + N * 4 + g_pad * D * 4,
    )

    return pl.pallas_call(
        _prompt_kernel,
        out_shape=jax.ShapeDtypeStruct((N, D), x.dtype),
        grid_spec=pl.GridSpec(
            grid=grid,
            in_specs=[
                # per-tile graph ids (tiny DMA per step)
                pl.BlockSpec((tile_n, 1), lambda i: (i, 0)),
                # x tile: tile_n rows, full feature width (lane-dense stores;
                # D == full array dim so no 128-divisibility requirement)
                pl.BlockSpec((tile_n, D), lambda i: (i, 0)),
                # bias table: full array, constant block index -> DMA'd once,
                # resident in VMEM across all grid steps
                pl.BlockSpec((g_pad, D), lambda i: (0, 0)),
            ],
            out_specs=pl.BlockSpec((tile_n, D), lambda i: (i, 0)),
        ),
        compiler_params=pltpu.CompilerParams(
            dimension_semantics=("parallel",),
            vmem_limit_bytes=vmem_limit,
        ),
        cost_estimate=cost,
    )(batch_col, x, b_p)


if __name__ == "__main__":
    key = jax.random.PRNGKey(0)
    kx, kb = jax.random.split(key)

    # Small shapes consistent with the module: N "node" rows, D features,
    # `batch` assigns each row to one of G graphs.
    N, D = 8, 32
    batch = jnp.array([0, 0, 0, 1, 1, 2, 2, 2], dtype=jnp.int32)
    G = int(jnp.max(batch)) + 1

    x = jax.random.normal(kx, (N, D), dtype=jnp.float32)
    # Deterministic init of the parameter b ~ Uniform(-ADV_STEP_SIZE, ADV_STEP_SIZE)
    # (mirrors the lazy nn.init.uniform_ in the PyTorch module).
    b = jax.random.uniform(
        kb, (G, D), dtype=jnp.float32,
        minval=-ADV_STEP_SIZE, maxval=ADV_STEP_SIZE,
    )

    out = prompt_forward(x, b, batch)
    out = jax.block_until_ready(out)

    # Reference check (plain JAX): x + b[batch]
    ref = x + b[batch]
    assert out.shape == (N, D)
    assert jnp.allclose(out, ref, atol=1e-6), "Pallas output mismatch vs reference"

    print("KERNEL_OK")
</pallas_src>

<mosaic_0001>
module attributes {stable_mosaic.version = 11 : i64} {
  func.func @_prompt_kernel(%arg0: i32, %arg1: memref<8x1xi32, #tpu.memory_space<vmem>>, %arg2: memref<8x32xf32, #tpu.memory_space<vmem>>, %arg3: memref<8x32xf32, #tpu.memory_space<vmem>>, %arg4: memref<8x32xf32, #tpu.memory_space<vmem>>) attributes {dimension_semantics = [#tpu.dimension_semantics<parallel>], iteration_bounds = array<i64: 1>, scalar_prefetch = 0 : i64, scratch_operands = 0 : i64, tpu.core_type = #tpu.core_type<tc>, window_params = [{transform_indices = @transform_0, window_bounds = array<i64: 8, 1>}, {transform_indices = @transform_1, window_bounds = array<i64: 8, 32>}, {pipeline_mode = #tpu.pipeline_mode<synchronous>, transform_indices = @transform_2, window_bounds = array<i64: 8, 32>}, {transform_indices = @transform_3, window_bounds = array<i64: 8, 32>}]} {
    %0 = tpu.iota {dimensions = array<i32: 1>} : vector<8x8xi32>
    %c0 = arith.constant 0 : index
    %c0_0 = arith.constant 0 : index
    %1 = vector.load %arg1[%c0, %c0_0] : memref<8x1xi32, #tpu.memory_space<vmem>>, vector<8x1xi32>
    %2 = vector.broadcast %1 : vector<8x1xi32> to vector<8x8xi32>
    %3 = arith.cmpi eq, %2, %0 : vector<8x8xi32>
    %4 = arith.extui %3 : vector<8x8xi1> to vector<8x8xi32>
    %5 = arith.sitofp %4 : vector<8x8xi32> to vector<8x8xf32>
    %c0_1 = arith.constant 0 : index
    %c0_2 = arith.constant 0 : index
    %6 = vector.load %arg3[%c0_1, %c0_2] : memref<8x32xf32, #tpu.memory_space<vmem>>, vector<8x32xf32>
    %cst = arith.constant dense<0.000000e+00> : vector<8x32xf32>
    %7 = tpu.matmul %5, %6, %cst {dimension_numbers = #tpu.dot_dimension_numbers<[1], [0], [0], [1], [0, 0, 1, 1], [], []>} : vector<8x8xf32>, vector<8x32xf32>, vector<8x32xf32> -> vector<8x32xf32>
    %c0_3 = arith.constant 0 : index
    %c0_4 = arith.constant 0 : index
    %8 = vector.load %arg2[%c0_3, %c0_4] : memref<8x32xf32, #tpu.memory_space<vmem>>, vector<8x32xf32>
    %9 = arith.addf %8, %7 : vector<8x32xf32>
    %c0_5 = arith.constant 0 : index
    %c0_6 = arith.constant 0 : index
    %10 = vector.load %arg4[%c0_5, %c0_6] : memref<8x32xf32, #tpu.memory_space<vmem>>, vector<8x32xf32>
    tpu.vector_store %arg4[%c0_5, %c0_6], %9 {strides = array<i32>} : memref<8x32xf32, #tpu.memory_space<vmem>>, vector<8x32xf32>,
    return
  }
  func.func @transform_0(%arg0: i32) -> (i32, i32) {
    %c0_i32 = arith.constant 0 : i32
    %c0_i32_0 = arith.constant 0 : i32
    return %arg0, %c0_i32 : i32, i32
  }
  func.func @transform_1(%arg0: i32) -> (i32, i32) {
    %c0_i32 = arith.constant 0 : i32
    %c0_i32_0 = arith.constant 0 : i32
    return %arg0, %c0_i32 : i32, i32
  }
  func.func @transform_2(%arg0: i32) -> (i32, i32) {
    %c0_i32 = arith.constant 0 : i32
    %c0_i32_0 = arith.constant 0 : i32
    %c0_i32_1 = arith.constant 0 : i32
    return %c0_i32, %c0_i32_0 : i32, i32
  }
  func.func @transform_3(%arg0: i32) -> (i32, i32) {
    %c0_i32 = arith.constant 0 : i32
    %c0_i32_0 = arith.constant 0 : i32
    return %arg0, %c0_i32 : i32, i32
  }
}

</mosaic_0001>

<bundles_post_ra>
// kernel: tpu_custom_call.1
= control target key start
LH: loop header
LB: loop body
LE: loop exit
PB: predicated region body
PF: predicated region fallthrough
CT: control target
= control target key end

     0   :  { %s200_s0 = inlined_call_operand.vmem [shape: s32[8,1], index: 0, kind: input, shape index: {}]   ;;  %s201_s1 = inlined_call_operand.vmem [shape: f32[8,32], index: 1, kind: input, shape index: {}]   ;;  %s202_s2 = inlined_call_operand.vmem [shape: f32[8,32], index: 2, kind: input, shape index: {}]   ;;  %s203_s3 = inlined_call_operand.hbm [shape: f32[8,32], index: 3, kind: output, shape index: {}]  }
   0x1   :  { %v17_v0 = vld [vmem:[%s200_s0] sm:$0xff] }
   0x2   :  { %8 = vsyncpa [#allocation3], 0  ;;  %v155_v1 = vmov 0   ;;  %v156_v2 = vmov 0.0   ;;  %v24_v3 = vld [vmem:[%s202_s2] sm:$0xff]  ;;  %vm157_vm0 = vmmov 0   ;;  %v15_v4 = vlaneseq }
   0x3   :  { %130 = vset.pattern.permute.xlu0 %v155_v1  ;;  %121 = vmatprep.subr.mxu0 %v156_v2  ;;  %vm25_vm1 = vcmask 64512   ;;  %v99_v8 = vld [vmem:[%s201_s1] sm:$0xff]  ;;  %s158_s17 = smov [#allocation2]   ;;  %vm101_vm3 = vcmask 261120  }
   0x4   :  { %19 = vperm.xlu0 %130, %v17_v0   ;;  %122 = vmatpush3.msra.mxu0 %v24_v3  ;;  %v16_v5 = vand.u32 127, %v15_v4  ;;  %s109_s18 = sshll.u32 %s158_s17, 4  ;;  %s110_s18 = int_to_ptr.vmem [resolvable:$true] %s109_s18 }
   0x5   :  { %123 = vmatprep.mubr.msk.f32.mxu0 %vm157_vm0, %v156_v2  ;;  %s131_s2 = scalar_lea.vmem %s110_s18, 128  ;;  %p136_p1 = scmp.lt.s32.totalorder %s110_s18, %s110_s18 }
   0x6   :  { %p132_p0 = scmp.ne.s32.totalorder %s110_s18, %s131_s2  ;;  %p137_p2 = scmp.lt.s32.totalorder %s131_s2, %s131_s2 }
   0x8   :  { %p138_p3 = por %p137_p2, %p136_p1 }
   0xa   :  { %p139_p4 = pnand %p138_p3, %p132_p0 }
  0x83   :  { %v20_v6 = vpop.permute.xlu0 %19 }
  0x84   :  { %vm21_vm2 = vcmp.eq.s32.totalorder %v20_v6, %v16_v5 }
  0x85   :  { %v117_v7 = vsel %vm21_vm2, 1.0, %v156_v2 }
  0x86   :  { %124 = vmatmul.mubr.msk.f32.vlgmr.msra.gmra.mrb[0].mxu0 %vm25_vm1, %v117_v7 }
 0x159   :  { %v95_v9 = vpop.f32.mrb[0].mxu0 }
 0x15a   :  { %v100_v10 = vadd.f32 %v99_v8, %v95_v9  ;;  %v125_v11 = vpop.f32.mrb[1].mxu0 }
 0x15c   :  { %102 = vst.msk [vmem:[#allocation2] sm:$0xff] %vm101_vm3, %v100_v10 }
 0x15d   :  { %142 = shalt.err (!%p139_p4)
}
 0x15e   :  { %s143_s21 = scalar_lea.hbm %s203_s3, 128 }
 0x15f   :  { %p144_p5 = scmp.ne.s32.totalorder %s203_s3, %s143_s21  ;;  %p147_p6 = scmp.lt.u32.totalorder %s143_s21, %s203_s3 }
 0x161   :  { %p149_p7 = pnand %p147_p6, %p144_p5 }
 0x163   :  { %152 = shalt.err (!%p149_p7)
}
 0x164   :  { %112 = dma.vmem_to_hbm [thread:$0]  %s110_s18, 128, %s203_s3, [#allocation3]  }
 0x165   :  { %153 = dma.done.wait [#allocation3], 128  }
 0x166   :  { %154 = vsyncadd [#allocation3], 4294967168 }
 0x167   :  { %116 = vsyncpa [#allocation3], 1 }

</bundles_post_ra>
